<compile_context>
chip_gen: v7x
topology: tpu7x:2x2x1
jax: 0.10.0
libtpu: 0.0.40
codegen_flags: <defaults>
</compile_context>

<pallas_src>
import functools

import jax
import jax.numpy as jnp
from jax.experimental import pallas as pl
from jax.experimental.pallas import tpu as pltpu


def _generator_kernel(x_ref, w1_ref, b1_ref, w2_ref, b2_ref, w3_ref, b3_ref,
                      o_ref):
    # Whole MLP forward for one batch tile.  Matmuls hit the MXU (bf16
    # operands when prepared params are bf16, f32 accumulation); bias adds,
    # ReLU and the in-kernel casts run on the VPU; tanh runs on the EUP.
    x = x_ref[...].astype(w1_ref.dtype)          # cast in-kernel (VPU, free slot)
    h1 = jnp.dot(x, w1_ref[...], preferred_element_type=jnp.float32)
    h1 = jnp.maximum(h1 + b1_ref[...], 0.0)
    h2 = jnp.dot(h1.astype(w2_ref.dtype), w2_ref[...],
                 preferred_element_type=jnp.float32)
    h2 = jnp.maximum(h2 + b2_ref[...], 0.0)
    h3 = jnp.dot(h2.astype(w3_ref.dtype), w3_ref[...],
                 preferred_element_type=jnp.float32)
    o_ref[...] = jnp.tanh(h3 + b3_ref[...]).astype(o_ref.dtype)


def prepare_generator_params(params, use_bf16=True):
    """One-time param prep (hoisted out of the per-call hot path).

    Casts weight matrices to bf16 for MXU-rate matmuls; biases stay f32
    (they are added to the f32 accumulator in-kernel).
    """
    wdt = jnp.bfloat16 if use_bf16 else jnp.float32
    return {
        "w1": params["w1"].astype(wdt), "b1": params["b1"].astype(jnp.float32),
        "w2": params["w2"].astype(wdt), "b2": params["b2"].astype(jnp.float32),
        "w3": params["w3"].astype(wdt), "b3": params["b3"].astype(jnp.float32),
    }


def _num_tensorcores_per_chip():
    """Best-effort TensorCore count (tiling hint only; safe fallback = 1)."""
    try:
        kind = jax.devices()[0].device_kind.lower()
    except Exception:
        return 1
    return 2 if ("v7" in kind or "v4" in kind or "v5p" in kind) else 1


def _choose_batch_tile(B, batch_tile, n_cores):
    tb = min(batch_tile, B)
    if n_cores >= 2 and B >= 32:
        # One large step per TensorCore (rounded up to 16 rows).
        per_core = ((B + n_cores - 1) // n_cores + 15) // 16 * 16
        tb = min(tb, per_core)
    if tb < B:
        # Multi-step grid: tile rows must be a sublane-friendly multiple
        # (16 for packed bf16 intermediates, 8 minimum for f32).
        tb = max(16, (tb // 16) * 16) if B >= 16 else max(8, (tb // 8) * 8)
    # tb == B (any value) is always legal: block equals the full array dim.
    return tb


@functools.partial(jax.jit, static_argnames=("batch_tile", "n_cores"))
def _generator_forward_jit(x, params, batch_tile, n_cores):
    B, latent_dim = x.shape
    w1, b1 = params["w1"], params["b1"]
    w2, b2 = params["w2"], params["b2"]
    w3, b3 = params["w3"], params["b3"]
    h1d, h2d = w1.shape[1], w2.shape[1]
    airfoil_dim = w3.shape[1]

    tb = _choose_batch_tile(B, batch_tile, n_cores)
    grid = (pl.cdiv(B, tb),)

    # Weights/biases are tiny (<100 KB): whole-array blocks with a constant
    # block index -> VMEM-resident, fetched once across the whole grid.
    full = lambda shape: pl.BlockSpec(shape, lambda i: (0, 0))

    wbytes = jnp.dtype(w1.dtype).itemsize
    flops = 2 * B * (latent_dim * h1d + h1d * h2d + h2d * airfoil_dim)
    bytes_accessed = (
        B * latent_dim * 4                                                # x (f32)
        + (latent_dim * h1d + h1d * h2d + h2d * airfoil_dim) * wbytes     # weights
        + (h1d + h2d + airfoil_dim) * 4                                   # biases
        + B * airfoil_dim * 4)                                            # output (f32)
    cost = pl.CostEstimate(flops=flops,
                           transcendentals=B * airfoil_dim,
                           bytes_accessed=bytes_accessed)

    return pl.pallas_call(
        _generator_kernel,
        out_shape=jax.ShapeDtypeStruct((B, airfoil_dim), jnp.float32),
        grid_spec=pltpu.PrefetchScalarGridSpec(
            num_scalar_prefetch=0,
            grid=grid,
            in_specs=[
                pl.BlockSpec((tb, latent_dim), lambda i: (i, 0)),  # x tile (f32)
                full((latent_dim, h1d)),
                full((1, h1d)),
                full((h1d, h2d)),
                full((1, h2d)),
                full((h2d, airfoil_dim)),
                full((1, airfoil_dim)),
            ],
            out_specs=pl.BlockSpec((tb, airfoil_dim), lambda i: (i, 0)),
        ),
        compiler_params=pltpu.CompilerParams(
            dimension_semantics=("parallel",)),
        cost_estimate=cost,
    )(x, w1, b1, w2, b2, w3, b3)


def generator_forward(x, prepared_params, batch_tile=2048):
    """x: [B, latent_dim] float32; prepared_params from prepare_generator_params."""
    n_cores = _num_tensorcores_per_chip()
    return _generator_forward_jit(x, prepared_params, batch_tile, n_cores)


def init_generator_params(key, latent_dim, airfoil_dim, hidden_dims=(64, 128)):
    """Deterministic init mimicking torch.nn.Linear default U(-1/sqrt(fan_in), ...)."""
    dims = [latent_dim] + list(hidden_dims) + [airfoil_dim]
    params = {}
    keys = jax.random.split(key, 2 * (len(dims) - 1))
    for li in range(len(dims) - 1):
        fan_in, fan_out = dims[li], dims[li + 1]
        bound = 1.0 / jnp.sqrt(fan_in)
        params[f"w{li + 1}"] = jax.random.uniform(
            keys[2 * li], (fan_in, fan_out), minval=-bound, maxval=bound,
            dtype=jnp.float32)
        params[f"b{li + 1}"] = jax.random.uniform(
            keys[2 * li + 1], (1, fan_out), minval=-bound, maxval=bound,
            dtype=jnp.float32)
    return params


def generator_reference(x, params):
    """Pure-JAX f32 reference of the same forward pass."""
    h = jnp.maximum(x @ params["w1"] + params["b1"], 0.0)
    h = jnp.maximum(h @ params["w2"] + params["b2"], 0.0)
    return jnp.tanh(h @ params["w3"] + params["b3"])


if __name__ == "__main__":
    latent_dim = 16
    airfoil_dim = 32

    key = jax.random.PRNGKey(0)
    k_param, k_x1, k_x2 = jax.random.split(key, 3)
    raw_params = init_generator_params(k_param, latent_dim, airfoil_dim,
                                       hidden_dims=(64, 128))

    # 1) Small batch, exact f32 weights: tight check against the reference.
    params_f32 = prepare_generator_params(raw_params, use_bf16=False)
    x_small = jax.random.normal(k_x1, (8, latent_dim), dtype=jnp.float32)
    out_small = jax.block_until_ready(generator_forward(x_small, params_f32))
    ref_small = generator_reference(x_small, raw_params)
    assert out_small.shape == (8, airfoil_dim)
    assert jnp.allclose(out_small, ref_small, atol=1e-5, rtol=1e-5)

    # 2) bf16 weights, multi-step grid with a partial last block (B=200,
    #    tile=64 -> 4 steps, last step covers 8 rows): verifies that
    #    compute on padding rows never corrupts in-range output rows.
    params_bf16 = prepare_generator_params(raw_params, use_bf16=True)
    B = 200
    x_big = jax.random.normal(k_x2, (B, latent_dim), dtype=jnp.float32)
    out_big = jax.block_until_ready(
        generator_forward(x_big, params_bf16, batch_tile=64))
    ref_big = generator_reference(x_big, raw_params)
    assert out_big.shape == (B, airfoil_dim)
    assert jnp.allclose(out_big, ref_big, atol=5e-2, rtol=5e-2)

    print("KERNEL_OK")
</pallas_src>

<mosaic_0001>
module attributes {stable_mosaic.version = 11 : i64} {
  func.func @_generator_kernel(%arg0: i32, %arg1: memref<8x16xf32, #tpu.memory_space<vmem>>, %arg2: memref<16x64xf32, #tpu.memory_space<vmem>>, %arg3: memref<1x64xf32, #tpu.memory_space<vmem>>, %arg4: memref<64x128xf32, #tpu.memory_space<vmem>>, %arg5: memref<1x128xf32, #tpu.memory_space<vmem>>, %arg6: memref<128x32xf32, #tpu.memory_space<vmem>>, %arg7: memref<1x32xf32, #tpu.memory_space<vmem>>, %arg8: memref<8x32xf32, #tpu.memory_space<vmem>>) attributes {dimension_semantics = [#tpu.dimension_semantics<parallel>], iteration_bounds = array<i64: 1>, scalar_prefetch = 0 : i64, scratch_operands = 0 : i64, tpu.core_type = #tpu.core_type<tc>, window_params = [{transform_indices = @transform_0, window_bounds = array<i64: 8, 16>}, {pipeline_mode = #tpu.pipeline_mode<synchronous>, transform_indices = @transform_1, window_bounds = array<i64: 16, 64>}, {pipeline_mode = #tpu.pipeline_mode<synchronous>, transform_indices = @transform_2, window_bounds = array<i64: 1, 64>}, {pipeline_mode = #tpu.pipeline_mode<synchronous>, transform_indices = @transform_3, window_bounds = array<i64: 64, 128>}, {pipeline_mode = #tpu.pipeline_mode<synchronous>, transform_indices = @transform_4, window_bounds = array<i64: 1, 128>}, {pipeline_mode = #tpu.pipeline_mode<synchronous>, transform_indices = @transform_5, window_bounds = array<i64: 128, 32>}, {pipeline_mode = #tpu.pipeline_mode<synchronous>, transform_indices = @transform_6, window_bounds = array<i64: 1, 32>}, {transform_indices = @transform_7, window_bounds = array<i64: 8, 32>}]} {
    %c0 = arith.constant 0 : index
    %c0_0 = arith.constant 0 : index
    %0 = vector.load %arg1[%c0, %c0_0] : memref<8x16xf32, #tpu.memory_space<vmem>>, vector<8x16xf32>
    %c0_1 = arith.constant 0 : index
    %c0_2 = arith.constant 0 : index
    %1 = vector.load %arg2[%c0_1, %c0_2] : memref<16x64xf32, #tpu.memory_space<vmem>>, vector<16x64xf32>
    %cst = arith.constant dense<0.000000e+00> : vector<8x64xf32>
    %2 = tpu.matmul %0, %1, %cst {dimension_numbers = #tpu.dot_dimension_numbers<[1], [0], [0], [1], [0, 0, 1, 1], [], []>} : vector<8x16xf32>, vector<16x64xf32>, vector<8x64xf32> -> vector<8x64xf32>
    %c0_3 = arith.constant 0 : index
    %c0_4 = arith.constant 0 : index
    %3 = vector.load %arg3[%c0_3, %c0_4] : memref<1x64xf32, #tpu.memory_space<vmem>>, vector<1x64xf32>
    %4 = vector.broadcast %3 : vector<1x64xf32> to vector<8x64xf32>
    %5 = arith.addf %2, %4 : vector<8x64xf32>
    %cst_5 = arith.constant 0.000000e+00 : f32
    %6 = vector.broadcast %cst_5 : f32 to vector<8x64xf32>
    %7 = arith.maximumf %5, %6 : vector<8x64xf32>
    %c0_6 = arith.constant 0 : index
    %c0_7 = arith.constant 0 : index
    %8 = vector.load %arg4[%c0_6, %c0_7] : memref<64x128xf32, #tpu.memory_space<vmem>>, vector<64x128xf32>
    %cst_8 = arith.constant dense<0.000000e+00> : vector<8x128xf32>
    %9 = tpu.matmul %7, %8, %cst_8 {dimension_numbers = #tpu.dot_dimension_numbers<[1], [0], [0], [1], [0, 0, 1, 1], [], []>} : vector<8x64xf32>, vector<64x128xf32>, vector<8x128xf32> -> vector<8x128xf32>
    %c0_9 = arith.constant 0 : index
    %c0_10 = arith.constant 0 : index
    %10 = vector.load %arg5[%c0_9, %c0_10] : memref<1x128xf32, #tpu.memory_space<vmem>>, vector<1x128xf32>
    %11 = vector.broadcast %10 : vector<1x128xf32> to vector<8x128xf32>
    %12 = arith.addf %9, %11 : vector<8x128xf32>
    %cst_11 = arith.constant 0.000000e+00 : f32
    %13 = vector.broadcast %cst_11 : f32 to vector<8x128xf32>
    %14 = arith.maximumf %12, %13 : vector<8x128xf32>
    %c0_12 = arith.constant 0 : index
    %c0_13 = arith.constant 0 : index
    %15 = vector.load %arg6[%c0_12, %c0_13] : memref<128x32xf32, #tpu.memory_space<vmem>>, vector<128x32xf32>
    %cst_14 = arith.constant dense<0.000000e+00> : vector<8x32xf32>
    %16 = tpu.matmul %14, %15, %cst_14 {dimension_numbers = #tpu.dot_dimension_numbers<[1], [0], [0], [1], [0, 0, 1, 1], [], []>} : vector<8x128xf32>, vector<128x32xf32>, vector<8x32xf32> -> vector<8x32xf32>
    %c0_15 = arith.constant 0 : index
    %c0_16 = arith.constant 0 : index
    %17 = vector.load %arg7[%c0_15, %c0_16] : memref<1x32xf32, #tpu.memory_space<vmem>>, vector<1x32xf32>
    %18 = vector.broadcast %17 : vector<1x32xf32> to vector<8x32xf32>
    %19 = arith.addf %16, %18 : vector<8x32xf32>
    %20 = math.tanh %19 : vector<8x32xf32>
    %c0_17 = arith.constant 0 : index
    %c0_18 = arith.constant 0 : index
    %21 = vector.load %arg8[%c0_17, %c0_18] : memref<8x32xf32, #tpu.memory_space<vmem>>, vector<8x32xf32>
    tpu.vector_store %arg8[%c0_17, %c0_18], %20 {strides = array<i32>} : memref<8x32xf32, #tpu.memory_space<vmem>>, vector<8x32xf32>,
    return
  }
  func.func @transform_0(%arg0: i32) -> (i32, i32) {
    %c0_i32 = arith.constant 0 : i32
    %c0_i32_0 = arith.constant 0 : i32
    return %arg0, %c0_i32 : i32, i32
  }
  func.func @transform_1(%arg0: i32) -> (i32, i32) {
    %c0_i32 = arith.constant 0 : i32
    %c0_i32_0 = arith.constant 0 : i32
    %c0_i32_1 = arith.constant 0 : i32
    return %c0_i32, %c0_i32_0 : i32, i32
  }
  func.func @transform_2(%arg0: i32) -> (i32, i32) {
    %c0_i32 = arith.constant 0 : i32
    %c0_i32_0 = arith.constant 0 : i32
    %c0_i32_1 = arith.constant 0 : i32
    return %c0_i32, %c0_i32_0 : i32, i32
  }
  func.func @transform_3(%arg0: i32) -> (i32, i32) {
    %c0_i32 = arith.constant 0 : i32
    %c0_i32_0 = arith.constant 0 : i32
    %c0_i32_1 = arith.constant 0 : i32
    return %c0_i32, %c0_i32_0 : i32, i32
  }
  func.func @transform_4(%arg0: i32) -> (i32, i32) {
    %c0_i32 = arith.constant 0 : i32
    %c0_i32_0 = arith.constant 0 : i32
    %c0_i32_1 = arith.constant 0 : i32
    return %c0_i32, %c0_i32_0 : i32, i32
  }
  func.func @transform_5(%arg0: i32) -> (i32, i32) {
    %c0_i32 = arith.constant 0 : i32
    %c0_i32_0 = arith.constant 0 : i32
    %c0_i32_1 = arith.constant 0 : i32
    return %c0_i32, %c0_i32_0 : i32, i32
  }
  func.func @transform_6(%arg0: i32) -> (i32, i32) {
    %c0_i32 = arith.constant 0 : i32
    %c0_i32_0 = arith.constant 0 : i32
    %c0_i32_1 = arith.constant 0 : i32
    return %c0_i32, %c0_i32_0 : i32, i32
  }
  func.func @transform_7(%arg0: i32) -> (i32, i32) {
    %c0_i32 = arith.constant 0 : i32
    %c0_i32_0 = arith.constant 0 : i32
    return %arg0, %c0_i32 : i32, i32
  }
}

</mosaic_0001>

<bundles_post_ra>
// kernel: _generator_forward_jit.1
= control target key start
LH: loop header
LB: loop body
LE: loop exit
PB: predicated region body
PF: predicated region fallthrough
CT: control target
= control target key end

     0   :  { %v476_v2 = vmov 0.0|0.0   ;;  %vm477_vm0 = vmmov 0   ;;  %v478_v4 = vmov 0.0   ;;  %vm37_vm1 = vcmask 130048   ;;  %s638_s0 = inlined_call_operand.vmem [shape: f32[8,16], index: 0, kind: input, shape index: {}]   ;;  %s639_s1 = inlined_call_operand.vmem [shape: f32[16,64], index: 1, kind: input, shape index: {}]   ;;  %s640_s2 = inlined_call_operand.vmem [shape: f32[1,64], index: 2, kind: input, shape index: {}]   ;;  %s641_s3 = inlined_call_operand.vmem [shape: f32[64,128], index: 3, kind: input, shape index: {}]   ;;  %s642_s4 = inlined_call_operand.vmem [shape: f32[1,128], index: 4, kind: input, shape index: {}]   ;;  %s643_s5 = inlined_call_operand.vmem [shape: f32[128,32], index: 5, kind: input, shape index: {}]   ;;  %s644_s6 = inlined_call_operand.vmem [shape: f32[1,32], index: 6, kind: input, shape index: {}]   ;;  %s645_s7 = inlined_call_operand.hbm [shape: f32[8,32], index: 7, kind: output, shape index: {}]  }
   0x1   :  { %v28_v0 = vld [vmem:[%s639_s1] sm:$0xff]  ;;  %v29_v1 = vld [vmem:[%s639_s1 + $0x8] sm:$0xff]  ;;  %407 = vmatprep.subr.bf16.mxu1 %v476_v2  ;;  %350 = vmatprep.mubr.msk.f32.mxu1 %vm477_vm0, %v478_v4 }
   0x2   :  { %v408_v3 = vpack.c.bf16 %v29_v1, %v28_v0  ;;  %v112_v5 = vld [vmem:[%s641_s3] sm:$0xff]  ;;  %v113_v6 = vld [vmem:[%s641_s3 + $0x8] sm:$0xff]  ;;  %422 = vmatprep.subr.bf16.mxu0 %v476_v2  ;;  %404 = vmatprep.mubr.msk.f32.mxu0 %vm477_vm0, %v478_v4 }
   0x3   :  { %v27_v7 = vld [vmem:[%s638_s0] sm:$0xff]  ;;  %v411_v8 = vpack.c.bf16 %v113_v6, %v112_v5 }
   0x4   :  { %409 = vmatpush3.bf16.msra.mxu1 %v408_v3 }
   0x5   :  { %12 = vsyncpa [#allocation3], 0  ;;  %410 = vmatprep.subr.bf16.mxu1 %v476_v2  ;;  %v114_v9 = vld [vmem:[%s641_s3 + $0x10] sm:$0xff]  ;;  %v115_v10 = vld [vmem:[%s641_s3 + $0x18] sm:$0xff]  ;;  %vm127_vm2 = vcmask 523264   ;;  %vm296_vm3 = vcmask 261120  }
   0x6   :  { %v414_v11 = vpack.c.bf16 %v115_v10, %v114_v9  ;;  %v116_v12 = vld [vmem:[%s641_s3 + $0x20] sm:$0xff]  ;;  %v117_v13 = vld [vmem:[%s641_s3 + $0x28] sm:$0xff]  ;;  %v118_v15 = vld [vmem:[%s641_s3 + $0x30] sm:$0xff] }
   0x7   :  { %351 = vmatmul.mubr.msk.f32.vlgmr.msra.gmra.mrb[0].mxu1 %vm37_vm1, %v27_v7  ;;  %v417_v14 = vpack.c.bf16 %v117_v13, %v116_v12  ;;  %v119_v16 = vld [vmem:[%s641_s3 + $0x38] sm:$0xff]  ;;  %v202_v18 = vld [vmem:[%s643_s5] sm:$0xff]  ;;  %v203_v19 = vld [vmem:[%s643_s5 + $0x8] sm:$0xff] }
   0x8   :  { %412 = vmatpush3.bf16.msra.mxu1 %v411_v8  ;;  %369 = vmatprep.mubr.msk.f32.mxu1 %vm477_vm0, %v478_v4  ;;  %v420_v17 = vpack.c.bf16 %v119_v16, %v118_v15  ;;  %v204_v20 = vld [vmem:[%s643_s5 + $0x10] sm:$0xff]  ;;  %v423_v21 = vpack.c.bf16 %v203_v19, %v202_v18  ;;  %v205_v22 = vld [vmem:[%s643_s5 + $0x18] sm:$0xff]  ;;  %v206_v24 = vld [vmem:[%s643_s5 + $0x20] sm:$0xff] }
   0x9   :  { %413 = vmatprep.subr.bf16.mxu1 %v476_v2  ;;  %v426_v23 = vpack.c.bf16 %v205_v22, %v204_v20  ;;  %v207_v25 = vld [vmem:[%s643_s5 + $0x28] sm:$0xff]  ;;  %v208_v27 = vld [vmem:[%s643_s5 + $0x30] sm:$0xff]  ;;  %v209_v28 = vld [vmem:[%s643_s5 + $0x38] sm:$0xff] }
   0xa   :  { %424 = vmatpush3.bf16.msra.mxu0 %v423_v21  ;;  %v429_v26 = vpack.c.bf16 %v207_v25, %v206_v24  ;;  %v432_v29 = vpack.c.bf16 %v209_v28, %v208_v27  ;;  %v210_v30 = vld [vmem:[%s643_s5 + $0x40] sm:$0xff]  ;;  %v211_v31 = vld [vmem:[%s643_s5 + $0x48] sm:$0xff]  ;;  %v212_v33 = vld [vmem:[%s643_s5 + $0x50] sm:$0xff] }
   0xb   :  { %425 = vmatprep.subr.bf16.mxu0 %v476_v2  ;;  %v435_v32 = vpack.c.bf16 %v211_v31, %v210_v30  ;;  %v213_v34 = vld [vmem:[%s643_s5 + $0x58] sm:$0xff]  ;;  %v214_v36 = vld [vmem:[%s643_s5 + $0x60] sm:$0xff]  ;;  %v215_v37 = vld [vmem:[%s643_s5 + $0x68] sm:$0xff] }
   0xc   :  { %415 = vmatpush3.bf16.msra.mxu1 %v414_v11  ;;  %v438_v35 = vpack.c.bf16 %v213_v34, %v212_v33  ;;  %v441_v38 = vpack.c.bf16 %v215_v37, %v214_v36  ;;  %v312_v39 = vld [vmem:[%s640_s2] ss:$0 sm:$0xff]  ;;  %v216_v44 = vld [vmem:[%s643_s5 + $0x70] sm:$0xff]  ;;  %v217_v45 = vld [vmem:[%s643_s5 + $0x78] sm:$0xff]  ;;  %s479_s5 = smov [#allocation2]  }
   0xd   :  { %416 = vmatprep.subr.bf16.mxu1 %v476_v2  ;;  %v444_v46 = vpack.c.bf16 %v217_v45, %v216_v44  ;;  %v314_v47 = vld [vmem:[%s642_s4] ss:$0 sm:$0xff]  ;;  %s304_s8 = sshll.u32 %s479_s5, 4  ;;  %s305_s8 = int_to_ptr.vmem [resolvable:$true] %s304_s8 }
   0xe   :  { %427 = vmatpush3.bf16.msra.mxu0 %v426_v23  ;;  %v316_v52 = vld [vmem:[%s644_s6] ss:$0 sm:$0xff]  ;;  %s452_s4 = scalar_lea.vmem %s305_s8, 128  ;;  %p457_p1 = scmp.lt.s32.totalorder %s305_s8, %s305_s8 }
   0xf   :  { %428 = vmatprep.subr.bf16.mxu0 %v476_v2  ;;  %p453_p0 = scmp.ne.s32.totalorder %s305_s8, %s452_s4  ;;  %p458_p2 = scmp.lt.s32.totalorder %s452_s4, %s452_s4 }
  0x10   :  { %418 = vmatpush3.bf16.msra.mxu1 %v417_v14 }
  0x11   :  { %419 = vmatprep.subr.bf16.mxu1 %v476_v2  ;;  %p459_p3 = por %p458_p2, %p457_p1 }
  0x12   :  { %430 = vmatpush3.bf16.msra.mxu0 %v429_v26 }
  0x13   :  { %431 = vmatprep.subr.bf16.mxu0 %v476_v2  ;;  %p460_p4 = pnand %p459_p3, %p453_p0 }
  0x14   :  { %421 = vmatpush3.bf16.msra.mxu1 %v420_v17 }
  0x16   :  { %433 = vmatpush3.bf16.msra.mxu0 %v432_v29 }
  0x17   :  { %434 = vmatprep.subr.bf16.mxu0 %v476_v2 }
  0x1a   :  { %436 = vmatpush3.bf16.msra.mxu0 %v435_v32 }
  0x1b   :  { %437 = vmatprep.subr.bf16.mxu0 %v476_v2 }
  0x1e   :  { %439 = vmatpush3.bf16.msra.mxu0 %v438_v35 }
  0x1f   :  { %440 = vmatprep.subr.bf16.mxu0 %v476_v2 }
  0x22   :  { %442 = vmatpush3.bf16.msra.mxu0 %v441_v38 }
  0x23   :  { %443 = vmatprep.subr.bf16.mxu0 %v476_v2 }
  0x26   :  { %445 = vmatpush3.bf16.msra.mxu0 %v444_v46 }
  0xda   :  { %v107_v40 = vpop.f32.mrb[0].mxu1 }
  0xdb   :  { %v108_v41 = vadd.f32 %v312_v39, %v107_v40  ;;  %v352_v42 = vpop.f32.mrb[1].mxu1 }
  0xdd   :  { %v111_v43 = vmax.f32 %v108_v41, 0.0 }
  0xdf   :  { %370 = vmatmul.mubr.msk.f32.vlgmr.msra.gmra.mrb[2].mxu1 %vm127_vm2, %v111_v43 }
 0x1b2   :  { %v197_v48 = vpop.f32.mrb[2].mxu1 }
 0x1b3   :  { %v198_v49 = vadd.f32 %v314_v47, %v197_v48  ;;  %v371_v50 = vpop.f32.mrb[3].mxu1 }
 0x1b5   :  { %v201_v51 = vmax.f32 %v198_v49, 0.0 }
 0x1b7   :  { %405 = vmatmul.mubr.f32.vlgmr.msra.gmra.mrb[0].mxu0 %v201_v51 }
 0x28a   :  { %v291_v53 = vpop.f32.mrb[0].mxu0 }
 0x28b   :  { %v292_v54 = vadd.f32 %v316_v52, %v291_v53  ;;  %v406_v55 = vpop.f32.mrb[1].mxu0 }
 0x28d   :  { %450 = vtanh.f32 %v292_v54 }
 0x297   :  { %v451_v56 = vpop.eup %450 }
 0x298   :  { %297 = vst.msk [vmem:[#allocation2] sm:$0xff] %vm296_vm3, %v451_v56 }
 0x299   :  { %463 = shalt.err (!%p460_p4)
}
 0x29a   :  { %s464_s6 = scalar_lea.hbm %s645_s7, 128 }
 0x29b   :  { %p465_p5 = scmp.ne.s32.totalorder %s645_s7, %s464_s6  ;;  %p468_p6 = scmp.lt.u32.totalorder %s464_s6, %s645_s7 }
 0x29d   :  { %p470_p7 = pnand %p468_p6, %p465_p5 }
 0x29f   :  { %473 = shalt.err (!%p470_p7)
}
 0x2a0   :  { %307 = dma.vmem_to_hbm [thread:$0]  %s305_s8, 128, %s645_s7, [#allocation3]  }
 0x2a1   :  { %474 = dma.done.wait [#allocation3], 128  }
 0x2a2   :  { %475 = vsyncadd [#allocation3], 4294967168 }
 0x2a3   :  { %311 = vsyncpa [#allocation3], 1 }

</bundles_post_ra>
